<compile_context>
chip_gen: v5e
topology: v5e:2x2
jax: 0.10.0
libtpu: 0.0.40
codegen_flags: <defaults>
</compile_context>

<pallas_src>
import functools

import jax
import jax.numpy as jnp
from jax import lax
from jax.experimental import pallas as pl
from jax.experimental.pallas import tpu as pltpu


def _lambda_attn_kernel(x_ref, *refs, fused):
    if fused:
        wqk_t_ref, wv_t_ref, gamma_ref, o_ref = refs
    else:
        wq_t_ref, wk_t_ref, wv_t_ref, gamma_ref, o_ref = refs

    x = x_ref[...]                                   # (c, n) f32, n = h*w minor
    c, n = x.shape
    xb = x.astype(jnp.bfloat16)

    # sim^T[j, i] = <q_i, k_j>  (rescale already folded into the weights).
    if fused:
        # t[c2, i] = sum_c1 Wqk[c1, c2] x[c1, i],  Wqk = rescale * Wq @ Wk^T.
        t = jnp.dot(wqk_t_ref[...], xb, preferred_element_type=jnp.float32)  # (c, n)
        sim_t = lax.dot_general(
            xb, t.astype(jnp.bfloat16),
            (((0,), (0,)), ((), ())),
            preferred_element_type=jnp.float32)                              # (n_j, n_i)
    else:
        q = jnp.dot(wq_t_ref[...], xb, preferred_element_type=jnp.float32)   # (d, n_i)
        k = jnp.dot(wk_t_ref[...], xb, preferred_element_type=jnp.float32)   # (d, n_j)
        sim_t = lax.dot_general(
            k.astype(jnp.bfloat16), q.astype(jnp.bfloat16),
            (((0,), (0,)), ((), ())),
            preferred_element_type=jnp.float32)                              # (n_j, n_i)

    # Numerically-stable softmax over keys (sublane axis); statistics in f32.
    m = jnp.max(sim_t, axis=0, keepdims=True)         # (1, n_i)
    p_t = jnp.exp(sim_t - m).astype(jnp.bfloat16)     # (n_j, n_i); max entry == 1

    # Value projection; appended ones row -> last row of attn@v is the softmax
    # denominator (rides the padded MXU M dimension for free).
    v = jnp.dot(wv_t_ref[...], xb, preferred_element_type=jnp.float32)       # (c, n_j)
    v_aug = jnp.concatenate(
        [v.astype(jnp.bfloat16), jnp.ones((1, n), jnp.bfloat16)], axis=0)    # (c+1, n_j)

    out_aug = jnp.dot(v_aug, p_t, preferred_element_type=jnp.float32)        # (c+1, n_i)
    out = out_aug[:c, :]                              # un-normalized attention output
    denom = out_aug[c:, :]                            # (1, n_i), >= 1 by construction

    inv = pl.reciprocal(denom, approx=True)           # EUP slot; safe since denom >= 1
    gamma = gamma_ref[0]                              # scalar read from SMEM
    o_ref[...] = (out * (inv * gamma) + x).astype(o_ref.dtype)


def _device_kind():
    try:
        return jax.devices()[0].device_kind.lower()
    except Exception:
        return ""


def _fuse_qk_threshold():
    # Fused (c x c) sim contraction is only free while c fits one MXU K pass.
    kind = _device_kind()
    if any(g in kind for g in ("v2", "v3", "v4", "v5")):
        return 128
    return 256


def _round_up(x, m):
    return -(-x // m) * m


def _vmem_limit_bytes(c, n):
    """Explicit scoped-VMEM budget for one grid step (one batch element)."""
    c_p = _round_up(c + 1, 8)
    n_p = _round_up(n, 128)
    blocks = 4 * c_p * n_p * 4                         # double-buffered in + out (f32)
    interm = c_p * n_p * (4 + 2 + 4 + 2 + 4 + 2 + 4)   # x, xb, t/q/k, v, v_aug, out_aug
    sim_p = n_p * n_p * (4 + 4 + 2)                    # sim_t, sim_t - m, p_t (bf16)
    weights = 4 * 2 * c_p * c_p * 2                    # double-buffered bf16 weights
    est = 2 * (blocks + interm + sim_p + weights) + (1 << 20)    # 2x safety margin
    cap = (56 << 20) if "7" in _device_kind() else (100 << 20)   # v7x: 64 MiB physical
    return int(min(cap, max(32 << 20, est)))


def lambda_net_attention(x_nchw, wq, wk, wv, gamma, *, fuse_qk=None):
    """x_nchw: [b, c, h, w] f32; wq/wk: [c, c//8] (in,out); wv: [c, c]; gamma: [1]."""
    b, c, h, w = x_nchw.shape
    n = h * w
    d = wq.shape[1]
    rescale = float(d) ** (-0.5)

    if fuse_qk is None:
        fuse_qk = c <= _fuse_qk_threshold()

    # Free reshape (contiguous h*w merge) -- no XLA transpose, one HBM pass.
    x_bcn = x_nchw.reshape(b, c, n)
    gamma1 = jnp.reshape(gamma, (1,)).astype(jnp.float32)
    wv_t = wv.T.astype(jnp.bfloat16)                                  # (c_out, c_in)

    if fuse_qk:
        # Wqk^T = rescale * Wk @ Wq^T  (computed once in f32, then bf16).
        wqk_t = (rescale * jnp.dot(wk, wq.T)).astype(jnp.bfloat16)    # (c, c)
        weight_args = (wqk_t, wv_t)
        weight_specs = [
            pl.BlockSpec((c, c), lambda i: (0, 0)),
            pl.BlockSpec((c, c), lambda i: (0, 0)),
        ]
    else:
        wq_t = (rescale * wq).T.astype(jnp.bfloat16)                  # (d, c)
        wk_t = wk.T.astype(jnp.bfloat16)                              # (d, c)
        weight_args = (wq_t, wk_t, wv_t)
        weight_specs = [
            pl.BlockSpec((d, c), lambda i: (0, 0)),
            pl.BlockSpec((d, c), lambda i: (0, 0)),
            pl.BlockSpec((c, c), lambda i: (0, 0)),
        ]

    kernel = functools.partial(_lambda_attn_kernel, fused=fuse_qk)

    out_bcn = pl.pallas_call(
        kernel,
        out_shape=jax.ShapeDtypeStruct((b, c, n), x_bcn.dtype),
        grid_spec=pltpu.PrefetchScalarGridSpec(
            num_scalar_prefetch=0,
            grid=(b,),
            in_specs=[pl.BlockSpec((None, c, n), lambda i: (i, 0, 0))]   # x (per batch)
            + weight_specs
            + [pl.BlockSpec(memory_space=pltpu.MemorySpace.SMEM)],       # gamma scalar
            out_specs=pl.BlockSpec((None, c, n), lambda i: (i, 0, 0)),
        ),
        compiler_params=pltpu.CompilerParams(
            dimension_semantics=("parallel",),
            vmem_limit_bytes=_vmem_limit_bytes(c, n),
        ),
    )(x_bcn, *weight_args, gamma1)

    return out_bcn.reshape(b, c, h, w)


def lambda_net_attention_ref(x_nchw, wq, wk, wv, gamma):
    """Pure-JAX f32 reference mirroring the PyTorch forward."""
    b, c, h, w = x_nchw.shape
    x = jnp.transpose(x_nchw, (0, 2, 3, 1)).reshape(b, h * w, c)
    q = x @ wq
    k = x @ wk
    v = x @ wv
    d = wq.shape[1]
    sim = jnp.einsum("bid,bjd->bij", q, k) * (float(d) ** (-0.5))
    attn = jax.nn.softmax(sim, axis=-1)
    out = jnp.einsum("bij,bjd->bid", attn, v)
    out = gamma * out + x
    return jnp.transpose(out.reshape(b, h, w, c), (0, 3, 1, 2))


if __name__ == "__main__":
    # Small shapes consistent with the module: dim must be divisible by 8.
    batch, dim, H, W = 2, 32, 8, 8
    d_qk = dim // 8

    key = jax.random.PRNGKey(0)
    kx, kq, kk, kv = jax.random.split(key, 4)

    x = jax.random.normal(kx, (batch, dim, H, W), dtype=jnp.float32)

    # Deterministic parameter init (PyTorch Linear weight is (out,in); we store
    # the transposed (in,out) form used by x @ W).
    scale = 1.0 / jnp.sqrt(jnp.float32(dim))
    wq = jax.random.uniform(kq, (dim, d_qk), jnp.float32, -scale, scale)
    wk = jax.random.uniform(kk, (dim, d_qk), jnp.float32, -scale, scale)
    wv = jax.random.uniform(kv, (dim, dim), jnp.float32, -scale, scale)
    gamma = jnp.ones((1,), dtype=jnp.float32)

    ref = lambda_net_attention_ref(x, wq, wk, wv, gamma)

    # Fused Wq@Wk^T path (default for c <= MXU K width).
    out = jax.block_until_ready(lambda_net_attention(x, wq, wk, wv, gamma))
    assert out.shape == (batch, dim, H, W)
    # bf16 MXU operands + approx reciprocal -> relaxed tolerance vs f32 ref.
    assert jnp.allclose(out, ref, atol=2e-2, rtol=2e-2)

    # Non-fused q/k path (used at large c); exercised here for coverage.
    out_nf = jax.block_until_ready(
        lambda_net_attention(x, wq, wk, wv, gamma, fuse_qk=False))
    assert jnp.allclose(out_nf, ref, atol=2e-2, rtol=2e-2)

    print("KERNEL_OK")
</pallas_src>

<mosaic_0001>
module attributes {stable_mosaic.version = 11 : i64} {
  func.func @_lambda_attn_kernel(%arg0: i32, %arg1: memref<1x32x64xf32, #tpu.memory_space<vmem>>, %arg2: memref<32x32xbf16, #tpu.memory_space<vmem>>, %arg3: memref<32x32xbf16, #tpu.memory_space<vmem>>, %arg4: memref<1xf32, #tpu.memory_space<smem>>, %arg5: memref<1x32x64xf32, #tpu.memory_space<vmem>>) attributes {dimension_semantics = [#tpu.dimension_semantics<parallel>], iteration_bounds = array<i64: 2>, scalar_prefetch = 0 : i64, scratch_operands = 0 : i64, tpu.core_type = #tpu.core_type<tc>, window_params = [{transform_indices = @transform_0, window_bounds = array<i64: 1, 32, 64>}, {pipeline_mode = #tpu.pipeline_mode<synchronous>, transform_indices = @transform_1, window_bounds = array<i64: 32, 32>}, {pipeline_mode = #tpu.pipeline_mode<synchronous>, transform_indices = @transform_2, window_bounds = array<i64: 32, 32>}, {transform_indices = @transform_3, window_bounds = array<i64: 1>}, {transform_indices = @transform_4, window_bounds = array<i64: 1, 32, 64>}]} {
    %c0 = arith.constant 0 : index
    %c0_0 = arith.constant 0 : index
    %c0_1 = arith.constant 0 : index
    %0 = vector.load %arg1[%c0, %c0_0, %c0_1] : memref<1x32x64xf32, #tpu.memory_space<vmem>>, vector<1x32x64xf32>
    %1 = vector.shape_cast %0 : vector<1x32x64xf32> to vector<32x64xf32>
    %2 = arith.truncf %1 : vector<32x64xf32> to vector<32x64xbf16>
    %c0_2 = arith.constant 0 : index
    %c0_3 = arith.constant 0 : index
    %3 = vector.load %arg2[%c0_2, %c0_3] : memref<32x32xbf16, #tpu.memory_space<vmem>>, vector<32x32xbf16>
    %cst = arith.constant dense<0.000000e+00> : vector<32x64xf32>
    %4 = tpu.matmul %3, %2, %cst {dimension_numbers = #tpu.dot_dimension_numbers<[1], [0], [0], [1], [0, 0, 1, 1], [], []>} : vector<32x32xbf16>, vector<32x64xbf16>, vector<32x64xf32> -> vector<32x64xf32>
    %5 = arith.truncf %4 : vector<32x64xf32> to vector<32x64xbf16>
    %cst_4 = arith.constant dense<0.000000e+00> : vector<64x64xf32>
    %6 = tpu.matmul %2, %5, %cst_4 {dimension_numbers = #tpu.dot_dimension_numbers<[0], [0], [1], [1], [0, 1, 1, 1], [], []>} : vector<32x64xbf16>, vector<32x64xbf16>, vector<64x64xf32> -> vector<64x64xf32>
    %cst_5 = arith.constant dense<0xFF800000> : vector<64xf32>
    %7 = vector.multi_reduction <maximumf>, %6, %cst_5 [0] : vector<64x64xf32> to vector<64xf32>
    %8 = vector.shape_cast %7 : vector<64xf32> to vector<1x64xf32>
    %9 = vector.broadcast %8 : vector<1x64xf32> to vector<64x64xf32>
    %10 = arith.subf %6, %9 : vector<64x64xf32>
    %11 = math.exp %10 : vector<64x64xf32>
    %12 = arith.truncf %11 : vector<64x64xf32> to vector<64x64xbf16>
    %c0_6 = arith.constant 0 : index
    %c0_7 = arith.constant 0 : index
    %13 = vector.load %arg3[%c0_6, %c0_7] : memref<32x32xbf16, #tpu.memory_space<vmem>>, vector<32x32xbf16>
    %cst_8 = arith.constant dense<0.000000e+00> : vector<32x64xf32>
    %14 = tpu.matmul %13, %2, %cst_8 {dimension_numbers = #tpu.dot_dimension_numbers<[1], [0], [0], [1], [0, 0, 1, 1], [], []>} : vector<32x32xbf16>, vector<32x64xbf16>, vector<32x64xf32> -> vector<32x64xf32>
    %15 = arith.truncf %14 : vector<32x64xf32> to vector<32x64xbf16>
    %cst_9 = arith.constant 1.000000e+00 : bf16
    %16 = vector.broadcast %cst_9 : bf16 to vector<1x64xbf16>
    %17 = tpu.concatenate %15, %16 in 0 : vector<32x64xbf16>, vector<1x64xbf16> -> vector<33x64xbf16>
    %cst_10 = arith.constant dense<0.000000e+00> : vector<33x64xf32>
    %18 = tpu.matmul %17, %12, %cst_10 {dimension_numbers = #tpu.dot_dimension_numbers<[1], [0], [0], [1], [0, 0, 1, 1], [], []>} : vector<33x64xbf16>, vector<64x64xbf16>, vector<33x64xf32> -> vector<33x64xf32>
    %19 = vector.extract_strided_slice %18 {offsets = [0, 0], sizes = [32, 64], strides = [1, 1]} : vector<33x64xf32> to vector<32x64xf32>
    %20 = vector.extract_strided_slice %18 {offsets = [32, 0], sizes = [1, 64], strides = [1, 1]} : vector<33x64xf32> to vector<1x64xf32>
    %21 = tpu.reciprocal %20 {approx = true} : vector<1x64xf32> -> vector<1x64xf32>
    %c0_11 = arith.constant 0 : index
    %22 = memref.load %arg4[%c0_11] : memref<1xf32, #tpu.memory_space<smem>>
    %23 = vector.broadcast %22 : f32 to vector<1x64xf32>
    %24 = arith.mulf %21, %23 : vector<1x64xf32>
    %25 = vector.broadcast %24 : vector<1x64xf32> to vector<32x64xf32>
    %26 = arith.mulf %19, %25 : vector<32x64xf32>
    %27 = arith.addf %26, %1 : vector<32x64xf32>
    %c0_12 = arith.constant 0 : index
    %c0_13 = arith.constant 0 : index
    %c0_14 = arith.constant 0 : index
    %28 = vector.load %arg5[%c0_12, %c0_13, %c0_14] : memref<1x32x64xf32, #tpu.memory_space<vmem>>, vector<1x32x64xf32>
    %29 = vector.shape_cast %28 : vector<1x32x64xf32> to vector<32x64xf32>
    %30 = vector.shape_cast %27 : vector<32x64xf32> to vector<1x32x64xf32>
    tpu.vector_store %arg5[%c0_12, %c0_13, %c0_14], %30 {strides = array<i32>} : memref<1x32x64xf32, #tpu.memory_space<vmem>>, vector<1x32x64xf32>,
    return
  }
  func.func @transform_0(%arg0: i32) -> (i32, i32, i32) {
    %c0_i32 = arith.constant 0 : i32
    %c0_i32_0 = arith.constant 0 : i32
    %c0_i32_1 = arith.constant 0 : i32
    return %arg0, %c0_i32, %c0_i32_0 : i32, i32, i32
  }
  func.func @transform_1(%arg0: i32) -> (i32, i32) {
    %c0_i32 = arith.constant 0 : i32
    %c0_i32_0 = arith.constant 0 : i32
    %c0_i32_1 = arith.constant 0 : i32
    return %c0_i32, %c0_i32_0 : i32, i32
  }
  func.func @transform_2(%arg0: i32) -> (i32, i32) {
    %c0_i32 = arith.constant 0 : i32
    %c0_i32_0 = arith.constant 0 : i32
    %c0_i32_1 = arith.constant 0 : i32
    return %c0_i32, %c0_i32_0 : i32, i32
  }
  func.func @transform_3(%arg0: i32) -> i32 {
    %c0_i32 = arith.constant 0 : i32
    %c0_i32_0 = arith.constant 0 : i32
    return %c0_i32 : i32
  }
  func.func @transform_4(%arg0: i32) -> (i32, i32, i32) {
    %c0_i32 = arith.constant 0 : i32
    %c0_i32_0 = arith.constant 0 : i32
    %c0_i32_1 = arith.constant 0 : i32
    return %arg0, %c0_i32, %c0_i32_0 : i32, i32, i32
  }
}

</mosaic_0001>

<bundles_post_ra>
// kernel: tpu_custom_call.1
= control target key start
LH: loop header
LB: loop body
LE: loop exit
PB: predicated region body
PF: predicated region fallthrough
CT: control target
= control target key end

     0   :  { %s1148_s0 = inlined_call_operand.hbm [shape: f32[2,32,64], index: 0, kind: input, shape index: {}]   ;;  %s1149_s1 = inlined_call_operand.hbm [shape: bf16[32,32], index: 1, kind: input, shape index: {}]   ;;  %s1150_s2 = inlined_call_operand.hbm [shape: bf16[32,32], index: 2, kind: input, shape index: {}]   ;;  %s1151_s3 = inlined_call_operand.<no memory space> [shape: f32[1], index: 3, kind: input, shape index: {}]   ;;  %s1152_s4 = inlined_call_operand.hbm [shape: f32[2,32,64], index: 4, kind: output, shape index: {}]  }
   0x1   :  { %9 = sst [smem:[#allocation2]] %s1151_s3 }
   0x2   :  { %10 = vsyncpa [#allocation4], 0 }
   0x3   :  { %12 = vsyncpa [#allocation4 + $0x1], 0 }
   0x4   :  { %13 = vsyncpa [#allocation7], 0 }
   0x5   :  { %14 = vsyncpa [#allocation5], 0 }
   0x6   :  { %16 = vsyncpa [#allocation5 + $0x1], 0  ;;  %s964_s17 = smov 0   ;;  %s966_s18 = smov 0  }
   0x7   :  { %s968_s19 = smov 0   ;;  %s970_s20 = smov 0  }
   0x8 LB: > { %s985_s3 = sadd.s32 4294967295, %s925_s20   ;;  %s619_s21 = sadd.s32 4294967294, %s925_s20   ;;  %s925_s20 = sphi %s970_s20, %s1162_s20   ;;  %s921_s19 = sphi %s968_s19, %s1161_s19   ;;  %s917_s18 = sphi %s966_s18, %s1160_s18   ;;  %s913_s17 = sphi %s964_s17, %s1159_s17  }
   0x9   : > { %p42_p0 = scmp.ne.s32.totalorder %s917_s18, %s913_s17  ;;  %p43_p1 = scmp.eq.s32.totalorder %s985_s3, 0 }
   0xa   : > { %p129_p2 = scmp.eq.s32.totalorder %s985_s3, 1  ;;  %p135_p3 = scmp.eq.s32.totalorder %s619_s21, 1 }
   0xb   : > { %p994_p4 = por %p43_p1, %p42_p0  ;;  %p620_p5 = scmp.ge.s32.totalorder %s925_s20, 1 }
   0xc   : > { %p999_p6 = por %p135_p3, %p42_p0  ;;  %p142_p7 = scmp.lt.s32.totalorder %s925_s20, 3 }
   0xd   : > { %s153_s26 = sshll.u32 %s1149_s1, 4  ;;  %s927_s28 = smov [#allocation6]   ;;  %s154_s26 = int_to_ptr.hbm [resolvable:$true] %s153_s26 }
   0xe   : > { %p1007_p8 = pnand %p620_p5, %p142_p7  ;;  %s155_s29 = sshll.u32 %s927_s28, 4  ;;  %s156_s29 = int_to_ptr.vmem [resolvable:$true] %s155_s29 }
   0xf   : > { %s167_s6 = sshll.u32 %s1150_s2, 4  ;;  %s928_s7 = smov 64   ;;  %s168_s6 = int_to_ptr.hbm [resolvable:$true] %s167_s6 }
  0x10   : > { %p684_p9 = pneg %p1007_p8  ;;  %s929_s8 = smov 4  }
  0x11   : > { %s930_s9 = smov [#allocation8]   ;;  %s1020_s11 = sadd.s32 1, %s925_s20  }
  0x12   : > { %p685_p10 = pnand %p684_p9, %p43_p1  ;;  %s169_s10 = sshll.u32 %s930_s9, 4  ;;  %s170_s10 = int_to_ptr.vmem [resolvable:$true] %s169_s10 }
  0x13   : > { %s29_s12 = sadd.s32 1, %s921_s19  ;;  %s26_s13 = ssub.s32 %s925_s20, %s1020_s11 }
  0x14   : > { %687 = dma.hbm_to_vmem [thread:$0]  (!%p685_p10), %s154_s26, 256, %s156_s29, [#allocation7], %s928_s7, %s928_s7, %s929_s8  }
  0x15   : > { %690 = dma.hbm_to_vmem [thread:$0]  (!%p685_p10), %s168_s6, 256, %s170_s10, [#allocation7], %s928_s7, %s928_s7, %s929_s8  }
  0x16   : > { %p36_p12 = scmp.ne.s32.totalorder %s921_s19, %s917_s18  ;;  %p27_p13 = scmp.eq.s32.totalorder %s26_s13, 0 }
  0x17   : > { %p37_p0 = scmp.eq.s32.totalorder %s925_s20, 0  ;;  %p701_p5 = scmp.lt.s32.totalorder %s925_s20, 2 }
  0x18   : > { %p1030_p3 = por %p129_p2, %p36_p12  ;;  %s186_s16 = sand.u32 1, %s921_s19  }
  0x19   : > { %s1036_s15 = scalar_select %p27_p13, %s921_s19, %s29_s12  }
  0x1a   : > { %p38_p7 = por %p37_p0, %p36_p12  ;;  %s624_s21 = sshll.u32 %s186_s16, 5 }
  0x1b   : > { %s664_s24 = sshll.u32 %s925_s20, 5  ;;  %s190_s29 = scalar_lea.vmem [#allocation3], %s624_s21 }
  0x1c   : > { %s195_s28 = scalar_lea.hbm %s1148_s0, %s664_s24  ;;  %s198_s30 = sshll.u32 %s190_s29, 4  ;;  %s199_s30 = int_to_ptr.vmem [resolvable:$true] %s198_s30 }
  0x1d   : > { %s196_s5 = sshll.u32 %s195_s28, 4  ;;  %p1043_p2 = pnand %p701_p5, %p38_p7  ;;  %s197_s5 = int_to_ptr.hbm [resolvable:$true] %s196_s5 }
  0x1e   : > { %s187_s7 = scalar_lea.sflag [#allocation4], %s186_s16  ;;  %s825_s8 = sshra.s32 %s197_s5, 4  ;;  %s826_s8 = int_to_ptr.hbm [resolvable:$true] %s825_s8 }
  0x1f   : > { %s827_s9 = scalar_lea.hbm %s826_s8, 32  ;;  %p829_p10 = pneg %p1043_p2 }
  0x20   : > { %p828_p9 = scmp.ne.s32.totalorder %s826_s8, %s827_s9  ;;  %s832_s13 = scalar_lea.hbm %s1148_s0, 64 }
  0x21   : > { %p833_p0 = scmp.lt.s32.totalorder %s826_s8, %s1148_s0  ;;  %p834_p5 = scmp.lt.s32.totalorder %s832_s13, %s827_s9 }
  0x22   : > { %p830_p12 = pnand %p829_p10, %p828_p9 }
  0x23   : > { %p835_p7 = por %p834_p5, %p833_p0 }
  0x24   : > { %p831_p13 = pneg %p830_p12 }
  0x26   : > { %p836_p11 = pnand %p835_p7, %p831_p13 }
  0x28   : > { %839 = shalt.err (!%p836_p11)
}
  0x29   : > { %s931_s16 = smov 128   ;;  %s932_s25 = smov 8  }
  0x2a   : > { %694 = dma.hbm_to_vmem [thread:$0]  (!%p1043_p2), %s197_s5, 512, %s199_s30, %s187_s7, %s931_s16, %s931_s16, %s932_s25  }
  0x2b   : > { %210 = sbr.rel (%p1007_p8) target bundleno = 644 (0x284), region = 36  ;;  %s1060_s26 = sand.u32 (!%p1007_p8), 1, %s917_s18  }
  0x2c   : > { %s628_s28 = sshll.u32 (!%p1007_p8), %s1060_s26, 5  ;;  %s213_s29 = scalar_lea.sflag (!%p1007_p8), [#allocation4], %s1060_s26 }
  0x2d   : > { %s216_s8 = scalar_lea.vmem (!%p1007_p8), [#allocation3], %s628_s28 }
  0x30   : > { %900 = dma.done.wait (%p994_p4), %s213_s29, 512  }
  0x31   : > { %902 = vsyncadd (%p994_p4), %s213_s29, 4294966784 }
  0x32   : > { %904 = dma.done.wait (%p43_p1), [#allocation7], 512  }
  0x33   : > { %906 = vsyncadd (%p43_p1), [#allocation7], 4294966784  ;;  %v1074_v0 = vld [vmem:[%s216_s8 + $0x10] sm:$0xff]  ;;  %v1076_v1 = vld [vmem:[%s216_s8 + $0x18] sm:$0xff]  ;;  %vm274_vm0 = vcmask 261120   ;;  %vm359_vm1 = vcmask 523264  }
  0x34   : > { %v1078_v2 = vld [vmem:[%s216_s8] sm:$0xff]  ;;  %v259_v3 = vpack.c.bf16 %v1076_v1, %v1074_v0  ;;  %v1082_v4 = vld [vmem:[%s216_s8 + $0x8] sm:$0xff]  ;;  %v667_v16 = vld [vmem:[#allocation8] sm:$0xff]  ;;  %s495_s22 = sld [smem:[#allocation2]]  ;;  %s669_s27 = sshll.u32 %s985_s3, 5 }
  0x35   : > { %v258_v5 = vpack.c.bf16 %v1082_v4, %v1078_v2  ;;  %v665_v6 = vld [vmem:[#allocation6] sm:$0xff]  ;;  %v666_v7 = vld [vmem:[#allocation6 + $0x8] sm:$0xff]  ;;  %v668_v17 = vld [vmem:[#allocation8 + $0x8] sm:$0xff]  ;;  %s523_s6 = scalar_lea.hbm %s1152_s4, %s669_s27  ;;  %s251_s7 = scalar_lea.vmem [#allocation9], %s628_s28 }
  0x36   : > { %287 = vmatpush.bf16.msra.mxu0 %v259_v3  ;;  %435 = vmatpush.bf16.msra.mxu2 %v259_v3  ;;  %s524_s9 = sshll.u32 %s251_s7, 4  ;;  %s526_s10 = sshll.u32 %s523_s6, 4  ;;  %s525_s9 = int_to_ptr.vmem [resolvable:$true] %s524_s9  ;;  %s527_s10 = int_to_ptr.hbm [resolvable:$true] %s526_s10 }
  0x37   : > { %302 = vxpose.xlu0.c.b16.start [1/2] (short) (narrow) %v258_v5, 64  ;;  %s512_s3 = scalar_lea.sflag [#allocation5], %s1060_s26  ;;  %s869_s12 = sshra.s32 %s527_s10, 4  ;;  %s870_s12 = int_to_ptr.hbm [resolvable:$true] %s869_s12 }
  0x38   : > { %s871_s13 = scalar_lea.hbm %s870_s12, 32  ;;  %s875_s16 = scalar_lea.hbm %s1152_s4, 64 }
  0x39   : > { %p872_p1 = scmp.ne.s32.totalorder %s870_s12, %s871_s13  ;;  %p876_p11 = scmp.lt.s32.totalorder %s870_s12, %s1152_s4 }
  0x3a   : > { %288 = vmatpush.bf16.msra.mxu0 %v258_v5  ;;  %436 = vmatpush.bf16.msra.mxu2 %v258_v5  ;;  %p877_p2 = scmp.lt.s32.totalorder %s875_s16, %s871_s13 }
  0x3b   : > { %p873_p4 = pnand %p872_p1, %p1030_p3 }
  0x3c   : > { %p878_p9 = por %p877_p2, %p876_p11 }
  0x3d   : > { %640 = vmatmul.msk.bf16.vlgmr.msra.gmra.mxu0 %vm274_vm0, %v665_v6  ;;  %654 = vmatmul.msk.bf16.vlgmr.msra.gmra.mxu2 %vm274_vm0, %v667_v16  ;;  %p874_p8 = pneg %p873_p4 }
  0x3f   : > { %p879_p10 = pnand %p878_p9, %p874_p8 }
  0x47   : > { %303 = vxpose.xlu0.c.b16.end [2/2] (short) (narrow) %v259_v3, 64 }
  0x4d   : > { %641 = vmatmul.msk.bf16.gmra.mxu0 %vm274_vm0, %v666_v7  ;;  %655 = vmatmul.msk.bf16.gmra.mxu2 %vm274_vm0, %v668_v17 }
  0xba   : > { %v290_v8 = vpop.f32.mrf.mxu0 }
  0xc0   : > { %v438_v54 = vpop.f32.mrf.mxu2 }
  0xc2   : > { %v292_v9 = vpop.f32.mrf.mxu0 }
  0xc3   : > { %v300_v13 = vpack.c.bf16 %v292_v9, %v290_v8 }
  0xc8   : > { %v440_v9 = vpop.f32.mrf.mxu2 }
  0xc9   : > { %v449_v16 = vpack.c.bf16 %v440_v9, %v440_v9 }
  0xca   : > { %v295_v10 = vpop.f32.mrf.mxu0 }
  0xd2   : > { %v297_v11 = vpop.f32.mrf.mxu0 }
  0xd3   : > { %v301_v12 = vpack.c.bf16 %v297_v11, %v295_v10 }
  0xd5   : > { %336 = vmatpush.bf16.msrb.mxu0 %v301_v12  ;;  %670 = vmatpush.bf16.msra.mxu1 %v301_v12 }
  0xd9   : > { %337 = vmatpush.bf16.msrb.mxu0 %v300_v13  ;;  %671 = vmatpush.bf16.msra.mxu1 %v300_v13 }
  0xe3   : > { %v310_v14 = vpop.trf.xlu0 }
  0xe4   : > { %642 = vmatmul.msk.bf16.vlgmr.msrb.gmra.mxu0 %vm274_vm0, %v310_v14 }
  0xf3   : > { %v311_v15 = vpop.trf.xlu0 }
  0xf4   : > { %643 = vmatmul.msk.bf16.vlgmr.msra.gmra.mxu1 %vm274_vm0, %v311_v15  ;;  %v448_v15 = vpack.c.bf16 %v438_v54, %v438_v54 }
 0x103   : > { %v312_v18 = vpop.trf.xlu0 }
 0x104   : > { %644 = vmatmul.msk.bf16.gmra.mxu1 %vm274_vm0, %v312_v18 }
 0x113   : > { %v313_v19 = vpop.trf.xlu0 }
 0x114   : > { %645 = vmatmul.msk.bf16.gmra.mxu1 %vm274_vm0, %v313_v19 }
 0x161   : > { %v339_v24 = vpop.f32.mrf.mxu0 }
 0x162   : > { %v360_v33 = vsel %vm359_vm1, %v339_v24, -inf }
 0x169   : > { %v341_v26 = vpop.f32.mrf.mxu0 }
 0x16a   : > { %v361_v28 = vsel %vm359_vm1, %v341_v26, -inf }
 0x171   : > { %v344_v20 = vpop.f32.mrf.mxu1 }
 0x172   : > { %v362_v34 = vsel %vm359_vm1, %v344_v20, -inf }
 0x179   : > { %v346_v21 = vpop.f32.mrf.mxu1 }
 0x17a   : > { %v363_v35 = vsel %vm359_vm1, %v346_v21, -inf }
 0x181   : > { %v349_v22 = vpop.f32.mrf.mxu1 }
 0x182   : > { %v364_v29 = vsel %vm359_vm1, %v349_v22, -inf }
 0x183   : > { %v365_v37 = vmax.f32 %v360_v33, %v364_v29 }
 0x189   : > { %v351_v23 = vpop.f32.mrf.mxu1 }
 0x18a   : > { %v366_v27 = vsel %vm359_vm1, %v351_v23, -inf }
 0x18b   : > { %v367_v31 = vmax.f32 %v361_v28, %v366_v27 }
 0x18d   : > { %v372_v40 = vmax.f32 %v365_v37, %v367_v31  ;;  %v933_v31 = vmov 1065369472   ;;  %v496_v37 = vstv %s495_s22 }
 0x191   : > { %v354_v25 = vpop.f32.mrf.mxu1 }
 0x192   : > { %v368_v30 = vsel %vm359_vm1, %v354_v25, -inf }
 0x193   : > { %v369_v38 = vmax.f32 %v362_v34, %v368_v30 }
 0x199   : > { %v356_v32 = vpop.f32.mrf.mxu1 }
 0x19a   : > { %v370_v36 = vsel %vm359_vm1, %v356_v32, -inf }
 0x19b   : > { %v371_v39 = vmax.f32 %v363_v35, %v370_v36 }
 0x19d   : > { %v373_v41 = vmax.f32 %v369_v38, %v371_v39 }
 0x19f   : > { %v374_v42 = vmax.f32 %v372_v40, %v373_v41 }
 0x1a1   : > { %v375_v43 = vrot.slane %v374_v42, 4 }
 0x1a3   : > { %v376_v44 = vmax.f32 %v374_v42, %v375_v43 }
 0x1a5   : > { %v377_v45 = vrot.slane %v376_v44, 2 }
 0x1a7   : > { %v378_v46 = vmax.f32 %v376_v44, %v377_v45 }
 0x1a9   : > { %v379_v47 = vrot.slane %v378_v46, 1 }
 0x1ab   : > { %v380_v48 = vmax.f32 %v378_v46, %v379_v47 }
 0x1ad   : > { %v388_v49 = vsub.f32 %v356_v32, %v380_v48  ;;  %v387_v50 = vsub.f32 %v354_v25, %v380_v48  ;;  %v385_v51 = vsub.f32 %v349_v22, %v380_v48  ;;  %v386_v52 = vsub.f32 %v351_v23, %v380_v48 }
 0x1ae   : > { %v383_v57 = vsub.f32 %v344_v20, %v380_v48  ;;  %v384_v59 = vsub.f32 %v346_v21, %v380_v48  ;;  %v381_v61 = vsub.f32 %v339_v24, %v380_v48  ;;  %v382_v63 = vsub.f32 %v341_v26, %v380_v48  ;;  %v443_v20 = vpop.f32.mrf.mxu2 }
 0x1af   : > { %v403_v53 = vmul.f32 1.442695, %v388_v49  ;;  %v401_v55 = vmul.f32 1.442695, %v387_v50  ;;  %v397_v56 = vmul.f32 1.442695, %v385_v51  ;;  %v456_v21 = vunpack.c.l.b16 %v448_v15 }
 0x1b0   : > { %v399_v58 = vmul.f32 1.442695, %v386_v52  ;;  %v393_v60 = vmul.f32 1.442695, %v383_v57  ;;  %v395_v62 = vmul.f32 1.442695, %v384_v59  ;;  %v457_v22 = vunpack.c.l.b16 %v449_v16 }
 0x1b1   : > { %747 = vpow2.f32 %v403_v53  ;;  %v389_v5 = vmul.f32 1.442695, %v381_v61  ;;  %v391_v7 = vmul.f32 1.442695, %v382_v63  ;;  %v450_v26 = vpack.c.bf16 %v443_v20, %v443_v20 }
 0x1b2   : > { %749 = vpow2.f32 %v401_v55  ;;  %v460_v24 = vpack.c.b16 %v457_v22, %v456_v21 }
 0x1b3   : > { %751 = vpow2.f32 %v397_v56  ;;  %v458_v28 = vunpack.c.l.b16 %v450_v26 }
 0x1b4   : > { %753 = vpow2.f32 %v399_v58 }
 0x1b5   : > { %755 = vpow2.f32 %v393_v60 }
 0x1b6   : > { %757 = vpow2.f32 %v395_v62  ;;  %v445_v25 = vpop.f32.mrf.mxu2 }
 0x1b7   : > { %v748_v3 = vpop.eup %747  ;;  %759 = vpow2.f32 %v389_v5  ;;  %v451_v27 = vpack.c.bf16 %v445_v25, %v445_v25 }
 0x1b8   : > { %v750_v6 = vpop.eup %749  ;;  %761 = vpow2.f32 %v391_v7 }
 0x1b9   : > { %v752_v8 = vpop.eup %751  ;;  %v408_v10 = vpack.c.bf16 %v748_v3, %v750_v6  ;;  %v459_v29 = vunpack.c.l.b16 %v451_v27 }
 0x1ba   : > { %v754_v11 = vpop.eup %753 }
 0x1bb   : > { %475 = vmatpush.bf16.msra.mxu3 %v408_v10  ;;  %v756_v12 = vpop.eup %755  ;;  %v407_v13 = vpack.c.bf16 %v754_v11, %v752_v8  ;;  %v461_v30 = vpack.c.b16 %v459_v29, %v458_v28 }
 0x1bc   : > { %v758_v14 = vpop.eup %757 }
 0x1bd   : > { %v760_v17 = vpop.eup %759  ;;  %v406_v18 = vpack.c.bf16 %v758_v14, %v756_v12 }
 0x1be   : > { %v762_v19 = vpop.eup %761 }
 0x1bf   : > { %476 = vmatpush.bf16.msra.mxu3 %v407_v13  ;;  %v405_v23 = vpack.c.bf16 %v762_v19, %v760_v17 }
 0x1c3   : > { %477 = vmatpush.bf16.msra.mxu3 %v406_v18 }
 0x1c7   : > { %478 = vmatpush.bf16.msra.mxu3 %v405_v23 }
 0x1ca   : > { %656 = vmatmul.msk.bf16.vlgmr.msra.gmra.mxu3 %vm359_vm1, %v460_v24 }
 0x1da   : > { %657 = vmatmul.msk.bf16.gmra.mxu3 %vm359_vm1, %v461_v30 }
 0x1ea   : > { %658 = vmatmul.msk.bf16.gmra.mxu3 %vm359_vm1, %v933_v31 }
 0x24d   : > { %v480_v32 = vpop.f32.mrf.mxu3 }
 0x255   : > { %v482_v33 = vpop.f32.mrf.mxu3 }
 0x25d   : > { %v485_v34 = vpop.f32.mrf.mxu3 }
 0x265   : > { %v487_v35 = vpop.f32.mrf.mxu3 }
 0x26d   : > { %v490_v36 = vpop.f32.mrf.mxu3 }
 0x26e   : > { %763 = vrcp.f32 %v490_v36 }
 0x274   : > { %v764_v38 = vpop.eup %763 }
 0x275   : > { %v497_v39 = vmul.f32 %v764_v38, %v496_v37  ;;  %v492_v40 = vpop.f32.mrf.mxu3 }
 0x277   : > { %v498_v41 = vperm.slane %v497_v39, 0 }
 0x279   : > { %v499_v42 = vmul.f32 %v498_v41, %v480_v32  ;;  %v500_v43 = vmul.f32 %v498_v41, %v482_v33  ;;  %v501_v44 = vmul.f32 %v498_v41, %v485_v34  ;;  %v502_v45 = vmul.f32 %v498_v41, %v487_v35 }
 0x27b   : > { %v503_v46 = vadd.f32 %v499_v42, %v1078_v2  ;;  %v504_v47 = vadd.f32 %v500_v43, %v1082_v4  ;;  %v505_v48 = vadd.f32 %v501_v44, %v1074_v0  ;;  %v506_v49 = vadd.f32 %v502_v45, %v1076_v1 }
 0x27d   : > { %507 = vst.msk [vmem:[%s251_s7] sm:$0xff] %vm359_vm1, %v503_v46 }
 0x27e   : > { %508 = vst.msk [vmem:[%s251_s7 + $0x8] sm:$0xff] %vm359_vm1, %v504_v47 }
 0x27f   : > { %509 = vst.msk [vmem:[%s251_s7 + $0x10] sm:$0xff] %vm359_vm1, %v505_v48 }
 0x280   : > { %510 = vst.msk [vmem:[%s251_s7 + $0x18] sm:$0xff] %vm359_vm1, %v506_v49 }
 0x281   : > { %882 = shalt.err (!%p879_p10)
}
 0x282   : > { %s934_s26 = smov 128   ;;  %s935_s29 = smov 8  }
 0x283   : > { %682 = dma.vmem_to_hbm [thread:$0]  (%p1030_p3), %s525_s9, 512, %s527_s10, %s512_s3, %s934_s26, %s934_s26, %s935_s29  }
 0x284 PF: > { %s541_s8 = sand.u32 1, %s913_s17   ;;  %p1158_p12 = scmp.ge.s32.totalorder %s925_s20, 2 }
 0x285   : > { %s542_s22 = scalar_lea.sflag [#allocation5], %s541_s8 }
 0x286   : > { %p696_p13 = pnand %p1158_p12, %p999_p6 }
 0x288   : > { %p697_p0 = pneg %p696_p13 }
 0x28a   : > { %908 = dma.done.wait (%p697_p0), %s542_s22, 512  }
 0x28b   : > { %910 = vsyncadd (%p697_p0), %s542_s22, 4294966784  ;;  %p19_p5 = scmp.ge.s32.totalorder %s1020_s11, 4   ;;  %s1159_s17 = smov %s917_s18 }
 0x28c   : > { %s1160_s18 = smov %s921_s19  ;;  %s1161_s19 = smov %s1036_s15 }
 0x28d   : > { %s1162_s20 = smov %s1020_s11  ;;  %21 = sbr.rel (!%p19_p5) target bundleno = 8 (0x8), region = 89 }
 0x292   :  { %548 = vsyncpa [#allocation4], 1 }
 0x293   :  { %550 = vsyncpa [#allocation4 + $0x1], 1 }
 0x294   :  { %551 = vsyncpa [#allocation7], 1 }
 0x295   :  { %552 = vsyncpa [#allocation5], 1 }
 0x296   :  { %554 = vsyncpa [#allocation5 + $0x1], 1 }

</bundles_post_ra>
